<compile_context>
chip_gen: v5e
topology: v5e:2x2
jax: 0.10.0
libtpu: 0.0.40
codegen_flags: <defaults>
</compile_context>

<pallas_src>
import functools

import numpy as np
import jax
import jax.numpy as jnp
from jax.experimental import pallas as pl
from jax.experimental.pallas import tpu as pltpu


# ----------------------------------------------------------------------------
# Tile selection helper: lane tile is either the full extent or a multiple of
# 128, shrunk until the estimated VMEM footprint fits a conservative budget.
# ----------------------------------------------------------------------------
def _pick_tile(total, bytes_per_lane, max_tile, budget_bytes=8 * 1024 * 1024):
    t = int(max_tile)
    while t > 128 and bytes_per_lane * t > budget_bytes:
        t //= 2
    if total <= t:
        return int(total), 1
    return int(t), -(-int(total) // t)


# ----------------------------------------------------------------------------
# Pallas kernel 1: per-channel dice (with optional in-kernel sigmoid).
# Grid = (channel_groups, N, HW_chunks).  Accumulators are full-width
# (cg, chunk) VMEM buffers -> per-step work is pure VPU adds; the cross-lane
# reduction and the dice division happen only in the finalize branch.
# ----------------------------------------------------------------------------
def _dice_sums_kernel(in_ref, tg_ref, dice_ref, inter_acc, in2_acc, tg2_acc,
                      *, apply_sigmoid, epsilon, total_lanes, chunk):
    n = pl.program_id(1)
    k = pl.program_id(2)

    @pl.when(jnp.logical_and(n == 0, k == 0))
    def _():
        inter_acc[...] = jnp.zeros_like(inter_acc)
        in2_acc[...] = jnp.zeros_like(in2_acc)
        tg2_acc[...] = jnp.zeros_like(tg2_acc)

    x = in_ref[0].astype(jnp.float32)          # (cg, chunk); bf16 inputs upcast here
    t = tg_ref[0].astype(jnp.float32)          # (cg, chunk)
    if apply_sigmoid:
        x = 1.0 / (1.0 + jnp.exp(-x))

    if total_lanes % chunk != 0:               # mask the ragged tail chunk in-kernel
        lane = jax.lax.broadcasted_iota(jnp.int32, x.shape, 1)
        valid = lane < (total_lanes - k * chunk)
        x = jnp.where(valid, x, 0.0)
        t = jnp.where(valid, t, 0.0)

    inter_acc[...] += x * t                    # pure VPU accumulation
    in2_acc[...] += x * x
    tg2_acc[...] += t * t

    @pl.when(jnp.logical_and(n == pl.num_programs(1) - 1,
                             k == pl.num_programs(2) - 1))
    def _():
        inter = jnp.sum(inter_acc[...], axis=-1, keepdims=True)          # (cg, 1)
        denom = (jnp.sum(in2_acc[...], axis=-1, keepdims=True)
                 + jnp.sum(tg2_acc[...], axis=-1, keepdims=True))
        dice = 2.0 * inter / jnp.maximum(denom, epsilon)
        dice_ref[...] = jnp.broadcast_to(dice, dice_ref.shape)           # lane-dense store


def per_channel_dice_pallas(inp, tgt, *, apply_sigmoid, epsilon=1e-6, max_chunk=4096):
    """inp/tgt: (N, C, P) arrays (f32 or bf16); returns (C,) f32 per-channel dice."""
    N, C, P = inp.shape
    cg = 8 if (C % 8 == 0) else C              # channel group lives on sublanes
    ncg = C // cg
    # 2 inputs x 2 pipeline buffers x 4B + 3 f32 accumulators, per lane of the chunk
    chunk, nk = _pick_tile(P, bytes_per_lane=28 * cg, max_tile=max_chunk)

    kernel = functools.partial(_dice_sums_kernel, apply_sigmoid=apply_sigmoid,
                               epsilon=float(epsilon), total_lanes=P, chunk=chunk)
    out = pl.pallas_call(
        kernel,
        out_shape=jax.ShapeDtypeStruct((C, 128), jnp.float32),
        grid_spec=pltpu.PrefetchScalarGridSpec(
            num_scalar_prefetch=0,
            grid=(ncg, N, nk),
            in_specs=[pl.BlockSpec((1, cg, chunk), lambda c, n, k: (n, c, k)),
                      pl.BlockSpec((1, cg, chunk), lambda c, n, k: (n, c, k))],
            out_specs=pl.BlockSpec((cg, 128), lambda c, n, k: (c, 0)),
            scratch_shapes=[pltpu.VMEM((cg, chunk), jnp.float32),
                            pltpu.VMEM((cg, chunk), jnp.float32),
                            pltpu.VMEM((cg, chunk), jnp.float32)],
        ),
        compiler_params=pltpu.CompilerParams(
            dimension_semantics=("parallel", "arbitrary", "arbitrary")),
    )(inp, tgt)
    return out[:, 0]


def dice_loss_pallas(logits, masks, *, epsilon=1e-6):
    """DiceLoss (sigmoid normalization). logits/masks: (N, C, *spatial)."""
    N, C = int(logits.shape[0]), int(logits.shape[1])
    P = 1
    for d in logits.shape[2:]:
        P *= int(d)
    x = logits.reshape(N, C, P)                # free reshape, no HBM transpose
    t = masks
    if not jnp.issubdtype(t.dtype, jnp.floating):
        t = t.astype(jnp.float32)
    t = t.reshape(N, C, P)
    dice = per_channel_dice_pallas(x, t, apply_sigmoid=True, epsilon=epsilon)
    return 1.0 - jnp.mean(dice)


# ----------------------------------------------------------------------------
# Pallas kernel 2: affinity side loss.  Grid = (S samples, spatial tiles).
# For each sample, the predicted / target boundary affinities of a spatial tile
# are computed and the three dice sums accumulate in VMEM scratch; the dice is
# finalized on the last spatial tile.
# ----------------------------------------------------------------------------
def _affinity_dice_kernel(emb_ref, shemb_ref, seg_ref, shseg_ref, dice_ref,
                          inter_acc, in2_acc, tg2_acc,
                          *, delta, epsilon, total_lanes, tile):
    p = pl.program_id(1)

    @pl.when(p == 0)
    def _():
        inter_acc[...] = jnp.zeros_like(inter_acc)
        in2_acc[...] = jnp.zeros_like(in2_acc)
        tg2_acc[...] = jnp.zeros_like(tg2_acc)

    emb = emb_ref[...].astype(jnp.float32)        # (C, tile)
    sh_emb = shemb_ref[0].astype(jnp.float32)     # (C, tile)
    diff = emb - sh_emb
    dist = jnp.sqrt(jnp.sum(diff * diff, axis=0, keepdims=True))     # (1, tile) sublane reduce
    aff = jnp.maximum((2.0 * delta - dist) * (1.0 / (2.0 * delta)), 0.0)
    in_aff = 1.0 - aff * aff                                          # predicted boundary aff

    seg = seg_ref[...]                            # (1, tile) int32
    sh_seg = shseg_ref[0]                         # (1, tile) int32
    tg_aff = (seg != sh_seg).astype(jnp.float32)  # target boundary aff in {0, 1}

    if total_lanes % tile != 0:                   # mask the ragged tail tile in-kernel
        lane = jax.lax.broadcasted_iota(jnp.int32, in_aff.shape, 1)
        valid = lane < (total_lanes - p * tile)
        in_aff = jnp.where(valid, in_aff, 0.0)
        tg_aff = jnp.where(valid, tg_aff, 0.0)

    inter_acc[...] += in_aff * tg_aff
    in2_acc[...] += in_aff * in_aff
    tg2_acc[...] += tg_aff                        # tg_aff is 0/1 so tg^2 == tg

    @pl.when(p == pl.num_programs(1) - 1)
    def _():
        inter = jnp.sum(inter_acc[...], axis=-1, keepdims=True)       # (1, 1)
        denom = (jnp.sum(in2_acc[...], axis=-1, keepdims=True)
                 + jnp.sum(tg2_acc[...], axis=-1, keepdims=True))
        dice = 2.0 * inter / jnp.maximum(denom, epsilon)
        dice_ref[...] = jnp.broadcast_to(dice, dice_ref.shape)        # lane-dense (1,8,128)


def affinity_side_loss_pallas(embeddings, target, offsets, delta, *, epsilon=1e-6,
                              max_tile=2048):
    """embeddings: (C, H, W); target: (H, W) integer labels; offsets: (S, 2) int32."""
    C, H, W = embeddings.shape
    S = int(offsets.shape[0])
    P = H * W

    # Replication-clipped shifted views (fused into the surrounding jit; all the
    # heavy reduction work runs in the Pallas kernel below).
    # TODO(synk): move the shifted embedding read into the kernel (scalar-prefetched
    #   offsets on a replication-padded copy) to avoid the (S, C, H, W) HBM stack.
    def shift2d(x, off):
        iy = jnp.clip(jnp.arange(H) + off[0], 0, H - 1)
        ix = jnp.clip(jnp.arange(W) + off[1], 0, W - 1)
        return jnp.take(jnp.take(x, iy, axis=-2), ix, axis=-1)

    seg = target.astype(jnp.int32)                                    # exact label compare
    shifted_emb = jax.vmap(lambda off: shift2d(embeddings, off))(offsets)   # (S, C, H, W)
    shifted_seg = jax.vmap(lambda off: shift2d(seg, off))(offsets)          # (S, H, W)

    emb2d = embeddings.reshape(C, P)
    shemb = shifted_emb.reshape(S, C, P)
    seg2d = seg.reshape(1, P)
    shseg = shifted_seg.reshape(S, 1, P)

    # 2 pipeline buffers x (2 x C f32 rows + 2 int32 seg rows) + 3 f32 accumulators per lane
    tile, nt = _pick_tile(P, bytes_per_lane=16 * C + 28, max_tile=max_tile)

    kernel = functools.partial(_affinity_dice_kernel, delta=float(delta),
                               epsilon=float(epsilon), total_lanes=P, tile=tile)
    out = pl.pallas_call(
        kernel,
        out_shape=jax.ShapeDtypeStruct((S, 8, 128), jnp.float32),
        grid_spec=pltpu.PrefetchScalarGridSpec(
            num_scalar_prefetch=0,
            grid=(S, nt),
            in_specs=[pl.BlockSpec((C, tile), lambda s, p: (0, p)),
                      pl.BlockSpec((1, C, tile), lambda s, p: (s, 0, p)),
                      pl.BlockSpec((1, tile), lambda s, p: (0, p)),
                      pl.BlockSpec((1, 1, tile), lambda s, p: (s, 0, p))],
            out_specs=pl.BlockSpec((1, 8, 128), lambda s, p: (s, 0, 0)),
            scratch_shapes=[pltpu.VMEM((1, tile), jnp.float32),
                            pltpu.VMEM((1, tile), jnp.float32),
                            pltpu.VMEM((1, tile), jnp.float32)],
        ),
        compiler_params=pltpu.CompilerParams(
            dimension_semantics=("parallel", "arbitrary")),
    )(emb2d, shemb, seg2d, shseg)
    dice = out[:, 0, 0]                                               # (S,)
    return 1.0 - jnp.mean(dice)


# ----------------------------------------------------------------------------
# CombinedAuxLoss: losses = [AffinitySideLoss, DiceLoss], one weight per loss.
# The forward is jitted; the random offsets are sampled on the host (mirroring
# the PyTorch np.random usage) but passed in as a traced int32 array so the
# compiled program is reused across steps.
# ----------------------------------------------------------------------------
class CombinedAuxLossPallas:
    def __init__(self, delta_dist, offset_ranges, n_samples, weights, seed=0,
                 epsilon=1e-6):
        assert all(len(r) == 2 for r in offset_ranges)
        self.delta = float(delta_dist)
        self.offset_ranges = offset_ranges
        self.n_samples = n_samples
        self.weights = tuple(float(w) for w in weights)
        self._rng = np.random.default_rng(seed)
        self.last_offsets = None

        delta = self.delta
        w = self.weights
        eps = float(epsilon)

        @jax.jit
        def _fwd_full(embeddings, target, offsets, instance_pmaps, instance_masks):
            r = w[0] * affinity_side_loss_pallas(embeddings, target, offsets, delta,
                                                 epsilon=eps)
            r = r + w[1] * dice_loss_pallas(instance_pmaps, instance_masks, epsilon=eps)
            return r

        @jax.jit
        def _fwd_aff(embeddings, target, offsets):
            return w[0] * affinity_side_loss_pallas(embeddings, target, offsets, delta,
                                                    epsilon=eps)

        self._fwd_full = _fwd_full
        self._fwd_aff = _fwd_aff

    def __call__(self, embeddings, target, instance_pmaps, instance_masks):
        offsets = [[int(self._rng.integers(lo, hi)) for (lo, hi) in self.offset_ranges]
                   for _ in range(self.n_samples)]
        self.last_offsets = offsets
        off = jnp.asarray(offsets, dtype=jnp.int32)       # (S, 2) traced -> no recompile
        if instance_masks is None:
            return self._fwd_aff(embeddings, target, off)
        return self._fwd_full(embeddings, target, off, instance_pmaps, instance_masks)


# ----------------------------------------------------------------------------
# Pure-JAX reference (mirrors the PyTorch math) for a correctness check.
# ----------------------------------------------------------------------------
def _reference(embeddings, target, instance_pmaps, instance_masks,
               offsets, delta, weights, eps=1e-6):
    C, H, W = embeddings.shape

    def shift2d(x, oy, ox):
        iy = jnp.clip(jnp.arange(H) + oy, 0, H - 1)
        ix = jnp.clip(jnp.arange(W) + ox, 0, W - 1)
        return jnp.take(jnp.take(x, iy, axis=-2), ix, axis=-1)

    def dice(i, t):
        i = i.reshape(i.shape[0], -1)
        t = t.reshape(t.shape[0], -1)
        inter = jnp.sum(i * t, -1)
        den = jnp.maximum(jnp.sum(i * i, -1) + jnp.sum(t * t, -1), eps)
        return 2.0 * inter / den

    sh_emb = jnp.stack([shift2d(embeddings, oy, ox) for oy, ox in offsets], 0)
    dist = jnp.sqrt(jnp.sum((embeddings[None] - sh_emb) ** 2, axis=1))
    affs = jnp.maximum((2 * delta - dist) / (2 * delta), 0.0) ** 2
    in_affs = 1.0 - affs
    tgt_f = target.astype(jnp.float32)
    sh_seg = jnp.stack([shift2d(tgt_f, oy, ox) for oy, ox in offsets], 0)
    tg_affs = 1.0 - (tgt_f[None] == sh_seg).astype(jnp.float32)
    aff_loss = 1.0 - jnp.mean(dice(in_affs, tg_affs))

    p = jax.nn.sigmoid(instance_pmaps)
    C2 = p.shape[1]
    pi = jnp.moveaxis(p, 1, 0).reshape(C2, -1)
    mi = jnp.moveaxis(instance_masks.astype(jnp.float32), 1, 0).reshape(C2, -1)
    d_loss = 1.0 - jnp.mean(dice(pi, mi))

    return weights[0] * aff_loss + weights[1] * d_loss


if __name__ == "__main__":
    key = jax.random.PRNGKey(0)
    k1, k2, k3, k4 = jax.random.split(key, 4)

    C, H, W = 8, 16, 16           # embedding channels, spatial
    N, C2 = 2, 4                  # instance pmaps batch, channels

    embeddings = jax.random.normal(k1, (C, H, W), dtype=jnp.float32)
    target = jax.random.randint(k2, (H, W), 0, 5).astype(jnp.float32)
    instance_pmaps = jax.random.normal(k3, (N, C2, H, W), dtype=jnp.float32)
    instance_masks = (jax.random.uniform(k4, (N, C2, H, W)) > 0.5).astype(jnp.float32)

    loss_mod = CombinedAuxLossPallas(
        delta_dist=2.0,
        offset_ranges=[(-4, 4), (-4, 4)],
        n_samples=4,
        weights=(0.5, 1.0),
        seed=0,
    )

    out = loss_mod(embeddings, target, instance_pmaps, instance_masks)
    out = jax.block_until_ready(out)

    ref = _reference(embeddings, target, instance_pmaps, instance_masks,
                     loss_mod.last_offsets, loss_mod.delta, loss_mod.weights)
    ref = jax.block_until_ready(ref)

    np.testing.assert_allclose(np.asarray(out), np.asarray(ref), rtol=1e-4, atol=1e-5)
    print("KERNEL_OK")
</pallas_src>

<mosaic_0001>
module attributes {stable_mosaic.version = 11 : i64} {
  func.func @_affinity_dice_kernel(%arg0: i32, %arg1: i32, %arg2: memref<8x256xf32, #tpu.memory_space<vmem>>, %arg3: memref<1x8x256xf32, #tpu.memory_space<vmem>>, %arg4: memref<1x256xi32, #tpu.memory_space<vmem>>, %arg5: memref<1x1x256xi32, #tpu.memory_space<vmem>>, %arg6: memref<1x8x128xf32, #tpu.memory_space<vmem>>, %arg7: memref<1x256xf32, #tpu.memory_space<vmem>>, %arg8: memref<1x256xf32, #tpu.memory_space<vmem>>, %arg9: memref<1x256xf32, #tpu.memory_space<vmem>>) attributes {dimension_semantics = [#tpu.dimension_semantics<parallel>, #tpu.dimension_semantics<arbitrary>], iteration_bounds = array<i64: 4, 1>, scalar_prefetch = 0 : i64, scratch_operands = 3 : i64, tpu.core_type = #tpu.core_type<tc>, window_params = [{transform_indices = @transform_0, window_bounds = array<i64: 8, 256>}, {transform_indices = @transform_1, window_bounds = array<i64: 1, 8, 256>}, {transform_indices = @transform_2, window_bounds = array<i64: 1, 256>}, {transform_indices = @transform_3, window_bounds = array<i64: 1, 1, 256>}, {transform_indices = @transform_4, window_bounds = array<i64: 1, 8, 128>}]} {
    %c0_i32 = arith.constant 0 : i32
    %0 = arith.cmpi eq, %arg1, %c0_i32 : i32
    %1 = arith.extui %0 : i1 to i32
    %c0_i32_0 = arith.constant 0 : i32
    %2 = arith.cmpi ne, %1, %c0_i32_0 : i32
    scf.if %2 {
      %cst_28 = arith.constant 0.000000e+00 : f32
      %40 = vector.broadcast %cst_28 : f32 to vector<1x256xf32>
      %c0_29 = arith.constant 0 : index
      %c0_30 = arith.constant 0 : index
      %41 = vector.load %arg7[%c0_29, %c0_30] : memref<1x256xf32, #tpu.memory_space<vmem>>, vector<1x256xf32>
      tpu.vector_store %arg7[%c0_29, %c0_30], %40 {strides = array<i32>} : memref<1x256xf32, #tpu.memory_space<vmem>>, vector<1x256xf32>,
      %cst_31 = arith.constant 0.000000e+00 : f32
      %42 = vector.broadcast %cst_31 : f32 to vector<1x256xf32>
      %c0_32 = arith.constant 0 : index
      %c0_33 = arith.constant 0 : index
      %43 = vector.load %arg8[%c0_32, %c0_33] : memref<1x256xf32, #tpu.memory_space<vmem>>, vector<1x256xf32>
      tpu.vector_store %arg8[%c0_32, %c0_33], %42 {strides = array<i32>} : memref<1x256xf32, #tpu.memory_space<vmem>>, vector<1x256xf32>,
      %cst_34 = arith.constant 0.000000e+00 : f32
      %44 = vector.broadcast %cst_34 : f32 to vector<1x256xf32>
      %c0_35 = arith.constant 0 : index
      %c0_36 = arith.constant 0 : index
      %45 = vector.load %arg9[%c0_35, %c0_36] : memref<1x256xf32, #tpu.memory_space<vmem>>, vector<1x256xf32>
      tpu.vector_store %arg9[%c0_35, %c0_36], %44 {strides = array<i32>} : memref<1x256xf32, #tpu.memory_space<vmem>>, vector<1x256xf32>,
    } else {
    }
    %c0 = arith.constant 0 : index
    %c0_1 = arith.constant 0 : index
    %3 = vector.load %arg2[%c0, %c0_1] : memref<8x256xf32, #tpu.memory_space<vmem>>, vector<8x256xf32>
    %c0_2 = arith.constant 0 : index
    %c0_3 = arith.constant 0 : index
    %c0_4 = arith.constant 0 : index
    %4 = vector.load %arg3[%c0_2, %c0_3, %c0_4] : memref<1x8x256xf32, #tpu.memory_space<vmem>>, vector<1x8x256xf32>
    %5 = vector.shape_cast %4 : vector<1x8x256xf32> to vector<8x256xf32>
    %6 = arith.subf %3, %5 : vector<8x256xf32>
    %7 = arith.mulf %6, %6 : vector<8x256xf32>
    %cst = arith.constant dense<0.000000e+00> : vector<256xf32>
    %8 = vector.multi_reduction <add>, %7, %cst [0] : vector<8x256xf32> to vector<256xf32>
    %9 = vector.shape_cast %8 : vector<256xf32> to vector<1x256xf32>
    %10 = math.sqrt %9 : vector<1x256xf32>
    %cst_5 = arith.constant 4.000000e+00 : f32
    %11 = vector.broadcast %cst_5 : f32 to vector<1x256xf32>
    %12 = arith.subf %11, %10 : vector<1x256xf32>
    %cst_6 = arith.constant 2.500000e-01 : f32
    %13 = vector.broadcast %cst_6 : f32 to vector<1x256xf32>
    %14 = arith.mulf %12, %13 : vector<1x256xf32>
    %cst_7 = arith.constant 0.000000e+00 : f32
    %15 = vector.broadcast %cst_7 : f32 to vector<1x256xf32>
    %16 = arith.maximumf %14, %15 : vector<1x256xf32>
    %17 = arith.mulf %16, %16 : vector<1x256xf32>
    %cst_8 = arith.constant 1.000000e+00 : f32
    %18 = vector.broadcast %cst_8 : f32 to vector<1x256xf32>
    %19 = arith.subf %18, %17 : vector<1x256xf32>
    %c0_9 = arith.constant 0 : index
    %c0_10 = arith.constant 0 : index
    %20 = vector.load %arg4[%c0_9, %c0_10] : memref<1x256xi32, #tpu.memory_space<vmem>>, vector<1x256xi32>
    %c0_11 = arith.constant 0 : index
    %c0_12 = arith.constant 0 : index
    %c0_13 = arith.constant 0 : index
    %21 = vector.load %arg5[%c0_11, %c0_12, %c0_13] : memref<1x1x256xi32, #tpu.memory_space<vmem>>, vector<1x1x256xi32>
    %22 = vector.shape_cast %21 : vector<1x1x256xi32> to vector<1x256xi32>
    %23 = arith.cmpi ne, %20, %22 : vector<1x256xi32>
    %24 = arith.extui %23 : vector<1x256xi1> to vector<1x256xi32>
    %25 = arith.sitofp %24 : vector<1x256xi32> to vector<1x256xf32>
    %c0_14 = arith.constant 0 : index
    %c0_15 = arith.constant 0 : index
    %26 = vector.load %arg7[%c0_14, %c0_15] : memref<1x256xf32, #tpu.memory_space<vmem>>, vector<1x256xf32>
    %27 = arith.mulf %19, %25 : vector<1x256xf32>
    %28 = arith.addf %26, %27 : vector<1x256xf32>
    %c0_16 = arith.constant 0 : index
    %c0_17 = arith.constant 0 : index
    %29 = vector.load %arg7[%c0_16, %c0_17] : memref<1x256xf32, #tpu.memory_space<vmem>>, vector<1x256xf32>
    tpu.vector_store %arg7[%c0_16, %c0_17], %28 {strides = array<i32>} : memref<1x256xf32, #tpu.memory_space<vmem>>, vector<1x256xf32>,
    %c0_18 = arith.constant 0 : index
    %c0_19 = arith.constant 0 : index
    %30 = vector.load %arg8[%c0_18, %c0_19] : memref<1x256xf32, #tpu.memory_space<vmem>>, vector<1x256xf32>
    %31 = arith.mulf %19, %19 : vector<1x256xf32>
    %32 = arith.addf %30, %31 : vector<1x256xf32>
    %c0_20 = arith.constant 0 : index
    %c0_21 = arith.constant 0 : index
    %33 = vector.load %arg8[%c0_20, %c0_21] : memref<1x256xf32, #tpu.memory_space<vmem>>, vector<1x256xf32>
    tpu.vector_store %arg8[%c0_20, %c0_21], %32 {strides = array<i32>} : memref<1x256xf32, #tpu.memory_space<vmem>>, vector<1x256xf32>,
    %c0_22 = arith.constant 0 : index
    %c0_23 = arith.constant 0 : index
    %34 = vector.load %arg9[%c0_22, %c0_23] : memref<1x256xf32, #tpu.memory_space<vmem>>, vector<1x256xf32>
    %35 = arith.addf %34, %25 : vector<1x256xf32>
    %c0_24 = arith.constant 0 : index
    %c0_25 = arith.constant 0 : index
    %36 = vector.load %arg9[%c0_24, %c0_25] : memref<1x256xf32, #tpu.memory_space<vmem>>, vector<1x256xf32>
    tpu.vector_store %arg9[%c0_24, %c0_25], %35 {strides = array<i32>} : memref<1x256xf32, #tpu.memory_space<vmem>>, vector<1x256xf32>,
    %c0_i32_26 = arith.constant 0 : i32
    %37 = arith.cmpi eq, %arg1, %c0_i32_26 : i32
    %38 = arith.extui %37 : i1 to i32
    %c0_i32_27 = arith.constant 0 : i32
    %39 = arith.cmpi ne, %38, %c0_i32_27 : i32
    scf.if %39 {
      %c0_28 = arith.constant 0 : index
      %c0_29 = arith.constant 0 : index
      %40 = vector.load %arg7[%c0_28, %c0_29] : memref<1x256xf32, #tpu.memory_space<vmem>>, vector<1x256xf32>
      %cst_30 = arith.constant dense<0.000000e+00> : vector<1xf32>
      %41 = vector.multi_reduction <add>, %40, %cst_30 [1] : vector<1x256xf32> to vector<1xf32>
      %42 = vector.shape_cast %41 : vector<1xf32> to vector<1x1xf32>
      %c0_31 = arith.constant 0 : index
      %c0_32 = arith.constant 0 : index
      %43 = vector.load %arg8[%c0_31, %c0_32] : memref<1x256xf32, #tpu.memory_space<vmem>>, vector<1x256xf32>
      %cst_33 = arith.constant dense<0.000000e+00> : vector<1xf32>
      %44 = vector.multi_reduction <add>, %43, %cst_33 [1] : vector<1x256xf32> to vector<1xf32>
      %45 = vector.shape_cast %44 : vector<1xf32> to vector<1x1xf32>
      %c0_34 = arith.constant 0 : index
      %c0_35 = arith.constant 0 : index
      %46 = vector.load %arg9[%c0_34, %c0_35] : memref<1x256xf32, #tpu.memory_space<vmem>>, vector<1x256xf32>
      %cst_36 = arith.constant dense<0.000000e+00> : vector<1xf32>
      %47 = vector.multi_reduction <add>, %46, %cst_36 [1] : vector<1x256xf32> to vector<1xf32>
      %48 = vector.shape_cast %47 : vector<1xf32> to vector<1x1xf32>
      %49 = arith.addf %45, %48 : vector<1x1xf32>
      %cst_37 = arith.constant 2.000000e+00 : f32
      %50 = vector.broadcast %cst_37 : f32 to vector<1x1xf32>
      %51 = arith.mulf %50, %42 : vector<1x1xf32>
      %cst_38 = arith.constant 9.99999997E-7 : f32
      %52 = vector.broadcast %cst_38 : f32 to vector<1x1xf32>
      %53 = arith.maximumf %49, %52 : vector<1x1xf32>
      %54 = arith.divf %51, %53 : vector<1x1xf32>
      %55 = vector.shape_cast %54 : vector<1x1xf32> to vector<1x1x1xf32>
      %56 = vector.broadcast %55 : vector<1x1x1xf32> to vector<1x8x128xf32>
      %c0_39 = arith.constant 0 : index
      %c0_40 = arith.constant 0 : index
      %c0_41 = arith.constant 0 : index
      %57 = vector.load %arg6[%c0_39, %c0_40, %c0_41] : memref<1x8x128xf32, #tpu.memory_space<vmem>>, vector<1x8x128xf32>
      tpu.vector_store %arg6[%c0_39, %c0_40, %c0_41], %56 {strides = array<i32>} : memref<1x8x128xf32, #tpu.memory_space<vmem>>, vector<1x8x128xf32>,
    } else {
    }
    return
  }
  func.func @transform_0(%arg0: i32, %arg1: i32) -> (i32, i32) {
    %c0_i32 = arith.constant 0 : i32
    %c0_i32_0 = arith.constant 0 : i32
    return %c0_i32, %arg1 : i32, i32
  }
  func.func @transform_1(%arg0: i32, %arg1: i32) -> (i32, i32, i32) {
    %c0_i32 = arith.constant 0 : i32
    %c0_i32_0 = arith.constant 0 : i32
    return %arg0, %c0_i32, %arg1 : i32, i32, i32
  }
  func.func @transform_2(%arg0: i32, %arg1: i32) -> (i32, i32) {
    %c0_i32 = arith.constant 0 : i32
    %c0_i32_0 = arith.constant 0 : i32
    return %c0_i32, %arg1 : i32, i32
  }
  func.func @transform_3(%arg0: i32, %arg1: i32) -> (i32, i32, i32) {
    %c0_i32 = arith.constant 0 : i32
    %c0_i32_0 = arith.constant 0 : i32
    return %arg0, %c0_i32, %arg1 : i32, i32, i32
  }
  func.func @transform_4(%arg0: i32, %arg1: i32) -> (i32, i32, i32) {
    %c0_i32 = arith.constant 0 : i32
    %c0_i32_0 = arith.constant 0 : i32
    %c0_i32_1 = arith.constant 0 : i32
    return %arg0, %c0_i32, %c0_i32_0 : i32, i32, i32
  }
}

module attributes {stable_mosaic.version = 11 : i64} {
  func.func @_dice_sums_kernel(%arg0: i32, %arg1: i32, %arg2: i32, %arg3: memref<1x4x256xf32, #tpu.memory_space<vmem>>, %arg4: memref<1x4x256xf32, #tpu.memory_space<vmem>>, %arg5: memref<4x128xf32, #tpu.memory_space<vmem>>, %arg6: memref<4x256xf32, #tpu.memory_space<vmem>>, %arg7: memref<4x256xf32, #tpu.memory_space<vmem>>, %arg8: memref<4x256xf32, #tpu.memory_space<vmem>>) attributes {dimension_semantics = [#tpu.dimension_semantics<parallel>, #tpu.dimension_semantics<arbitrary>, #tpu.dimension_semantics<arbitrary>], iteration_bounds = array<i64: 1, 2, 1>, scalar_prefetch = 0 : i64, scratch_operands = 3 : i64, tpu.core_type = #tpu.core_type<tc>, window_params = [{transform_indices = @transform_0, window_bounds = array<i64: 1, 4, 256>}, {transform_indices = @transform_1, window_bounds = array<i64: 1, 4, 256>}, {transform_indices = @transform_2, window_bounds = array<i64: 4, 128>}]} {
    %c0_i32 = arith.constant 0 : i32
    %0 = arith.cmpi eq, %arg1, %c0_i32 : i32
    %c0_i32_0 = arith.constant 0 : i32
    %1 = arith.cmpi eq, %arg2, %c0_i32_0 : i32
    %2 = arith.andi %0, %1 : i1
    %3 = arith.extui %2 : i1 to i32
    %c0_i32_1 = arith.constant 0 : i32
    %4 = arith.cmpi ne, %3, %c0_i32_1 : i32
    scf.if %4 {
      %cst_23 = arith.constant 0.000000e+00 : f32
      %33 = vector.broadcast %cst_23 : f32 to vector<4x256xf32>
      %c0_24 = arith.constant 0 : index
      %c0_25 = arith.constant 0 : index
      %34 = vector.load %arg6[%c0_24, %c0_25] : memref<4x256xf32, #tpu.memory_space<vmem>>, vector<4x256xf32>
      tpu.vector_store %arg6[%c0_24, %c0_25], %33 {strides = array<i32>} : memref<4x256xf32, #tpu.memory_space<vmem>>, vector<4x256xf32>,
      %cst_26 = arith.constant 0.000000e+00 : f32
      %35 = vector.broadcast %cst_26 : f32 to vector<4x256xf32>
      %c0_27 = arith.constant 0 : index
      %c0_28 = arith.constant 0 : index
      %36 = vector.load %arg7[%c0_27, %c0_28] : memref<4x256xf32, #tpu.memory_space<vmem>>, vector<4x256xf32>
      tpu.vector_store %arg7[%c0_27, %c0_28], %35 {strides = array<i32>} : memref<4x256xf32, #tpu.memory_space<vmem>>, vector<4x256xf32>,
      %cst_29 = arith.constant 0.000000e+00 : f32
      %37 = vector.broadcast %cst_29 : f32 to vector<4x256xf32>
      %c0_30 = arith.constant 0 : index
      %c0_31 = arith.constant 0 : index
      %38 = vector.load %arg8[%c0_30, %c0_31] : memref<4x256xf32, #tpu.memory_space<vmem>>, vector<4x256xf32>
      tpu.vector_store %arg8[%c0_30, %c0_31], %37 {strides = array<i32>} : memref<4x256xf32, #tpu.memory_space<vmem>>, vector<4x256xf32>,
    } else {
    }
    %c0 = arith.constant 0 : index
    %c0_2 = arith.constant 0 : index
    %c0_3 = arith.constant 0 : index
    %5 = vector.load %arg3[%c0, %c0_2, %c0_3] : memref<1x4x256xf32, #tpu.memory_space<vmem>>, vector<1x4x256xf32>
    %6 = vector.shape_cast %5 : vector<1x4x256xf32> to vector<4x256xf32>
    %c0_4 = arith.constant 0 : index
    %c0_5 = arith.constant 0 : index
    %c0_6 = arith.constant 0 : index
    %7 = vector.load %arg4[%c0_4, %c0_5, %c0_6] : memref<1x4x256xf32, #tpu.memory_space<vmem>>, vector<1x4x256xf32>
    %8 = vector.shape_cast %7 : vector<1x4x256xf32> to vector<4x256xf32>
    %cst = arith.constant 0.000000e+00 : f32
    %9 = vector.broadcast %cst : f32 to vector<4x256xf32>
    %10 = arith.subf %9, %6 : vector<4x256xf32>
    %11 = math.exp %10 : vector<4x256xf32>
    %cst_7 = arith.constant 1.000000e+00 : f32
    %12 = vector.broadcast %cst_7 : f32 to vector<4x256xf32>
    %13 = arith.addf %12, %11 : vector<4x256xf32>
    %cst_8 = arith.constant 1.000000e+00 : f32
    %14 = vector.broadcast %cst_8 : f32 to vector<4x256xf32>
    %15 = arith.divf %14, %13 : vector<4x256xf32>
    %c0_9 = arith.constant 0 : index
    %c0_10 = arith.constant 0 : index
    %16 = vector.load %arg6[%c0_9, %c0_10] : memref<4x256xf32, #tpu.memory_space<vmem>>, vector<4x256xf32>
    %17 = arith.mulf %15, %8 : vector<4x256xf32>
    %18 = arith.addf %16, %17 : vector<4x256xf32>
    %c0_11 = arith.constant 0 : index
    %c0_12 = arith.constant 0 : index
    %19 = vector.load %arg6[%c0_11, %c0_12] : memref<4x256xf32, #tpu.memory_space<vmem>>, vector<4x256xf32>
    tpu.vector_store %arg6[%c0_11, %c0_12], %18 {strides = array<i32>} : memref<4x256xf32, #tpu.memory_space<vmem>>, vector<4x256xf32>,
    %c0_13 = arith.constant 0 : index
    %c0_14 = arith.constant 0 : index
    %20 = vector.load %arg7[%c0_13, %c0_14] : memref<4x256xf32, #tpu.memory_space<vmem>>, vector<4x256xf32>
    %21 = arith.mulf %15, %15 : vector<4x256xf32>
    %22 = arith.addf %20, %21 : vector<4x256xf32>
    %c0_15 = arith.constant 0 : index
    %c0_16 = arith.constant 0 : index
    %23 = vector.load %arg7[%c0_15, %c0_16] : memref<4x256xf32, #tpu.memory_space<vmem>>, vector<4x256xf32>
    tpu.vector_store %arg7[%c0_15, %c0_16], %22 {strides = array<i32>} : memref<4x256xf32, #tpu.memory_space<vmem>>, vector<4x256xf32>,
    %c0_17 = arith.constant 0 : index
    %c0_18 = arith.constant 0 : index
    %24 = vector.load %arg8[%c0_17, %c0_18] : memref<4x256xf32, #tpu.memory_space<vmem>>, vector<4x256xf32>
    %25 = arith.mulf %8, %8 : vector<4x256xf32>
    %26 = arith.addf %24, %25 : vector<4x256xf32>
    %c0_19 = arith.constant 0 : index
    %c0_20 = arith.constant 0 : index
    %27 = vector.load %arg8[%c0_19, %c0_20] : memref<4x256xf32, #tpu.memory_space<vmem>>, vector<4x256xf32>
    tpu.vector_store %arg8[%c0_19, %c0_20], %26 {strides = array<i32>} : memref<4x256xf32, #tpu.memory_space<vmem>>, vector<4x256xf32>,
    %c1_i32 = arith.constant 1 : i32
    %28 = arith.cmpi eq, %arg1, %c1_i32 : i32
    %c0_i32_21 = arith.constant 0 : i32
    %29 = arith.cmpi eq, %arg2, %c0_i32_21 : i32
    %30 = arith.andi %28, %29 : i1
    %31 = arith.extui %30 : i1 to i32
    %c0_i32_22 = arith.constant 0 : i32
    %32 = arith.cmpi ne, %31, %c0_i32_22 : i32
    scf.if %32 {
      %c0_23 = arith.constant 0 : index
      %c0_24 = arith.constant 0 : index
      %33 = vector.load %arg6[%c0_23, %c0_24] : memref<4x256xf32, #tpu.memory_space<vmem>>, vector<4x256xf32>
      %cst_25 = arith.constant dense<0.000000e+00> : vector<4xf32>
      %34 = vector.multi_reduction <add>, %33, %cst_25 [1] : vector<4x256xf32> to vector<4xf32>
      %35 = vector.shape_cast %34 : vector<4xf32> to vector<4x1xf32>
      %c0_26 = arith.constant 0 : index
      %c0_27 = arith.constant 0 : index
      %36 = vector.load %arg7[%c0_26, %c0_27] : memref<4x256xf32, #tpu.memory_space<vmem>>, vector<4x256xf32>
      %cst_28 = arith.constant dense<0.000000e+00> : vector<4xf32>
      %37 = vector.multi_reduction <add>, %36, %cst_28 [1] : vector<4x256xf32> to vector<4xf32>
      %38 = vector.shape_cast %37 : vector<4xf32> to vector<4x1xf32>
      %c0_29 = arith.constant 0 : index
      %c0_30 = arith.constant 0 : index
      %39 = vector.load %arg8[%c0_29, %c0_30] : memref<4x256xf32, #tpu.memory_space<vmem>>, vector<4x256xf32>
      %cst_31 = arith.constant dense<0.000000e+00> : vector<4xf32>
      %40 = vector.multi_reduction <add>, %39, %cst_31 [1] : vector<4x256xf32> to vector<4xf32>
      %41 = vector.shape_cast %40 : vector<4xf32> to vector<4x1xf32>
      %42 = arith.addf %38, %41 : vector<4x1xf32>
      %cst_32 = arith.constant 2.000000e+00 : f32
      %43 = vector.broadcast %cst_32 : f32 to vector<4x1xf32>
      %44 = arith.mulf %43, %35 : vector<4x1xf32>
      %cst_33 = arith.constant 9.99999997E-7 : f32
      %45 = vector.broadcast %cst_33 : f32 to vector<4x1xf32>
      %46 = arith.maximumf %42, %45 : vector<4x1xf32>
      %47 = arith.divf %44, %46 : vector<4x1xf32>
      %48 = vector.shape_cast %47 : vector<4x1xf32> to vector<4x1xf32>
      %49 = vector.broadcast %48 : vector<4x1xf32> to vector<4x128xf32>
      %c0_34 = arith.constant 0 : index
      %c0_35 = arith.constant 0 : index
      %50 = vector.load %arg5[%c0_34, %c0_35] : memref<4x128xf32, #tpu.memory_space<vmem>>, vector<4x128xf32>
      tpu.vector_store %arg5[%c0_34, %c0_35], %49 {strides = array<i32>} : memref<4x128xf32, #tpu.memory_space<vmem>>, vector<4x128xf32>,
    } else {
    }
    return
  }
  func.func @transform_0(%arg0: i32, %arg1: i32, %arg2: i32) -> (i32, i32, i32) {
    %c0_i32 = arith.constant 0 : i32
    return %arg1, %arg0, %arg2 : i32, i32, i32
  }
  func.func @transform_1(%arg0: i32, %arg1: i32, %arg2: i32) -> (i32, i32, i32) {
    %c0_i32 = arith.constant 0 : i32
    return %arg1, %arg0, %arg2 : i32, i32, i32
  }
  func.func @transform_2(%arg0: i32, %arg1: i32, %arg2: i32) -> (i32, i32) {
    %c0_i32 = arith.constant 0 : i32
    %c0_i32_0 = arith.constant 0 : i32
    return %arg0, %c0_i32 : i32, i32
  }
}

</mosaic_0001>

<bundles_post_ra>
// kernel: _fwd_full.3
= control target key start
LH: loop header
LB: loop body
LE: loop exit
PB: predicated region body
PF: predicated region fallthrough
CT: control target
= control target key end

     0   :  { %s530_s9 = smov 0   ;;  %s532_s10 = smov 0   ;;  %s580_s0 = inlined_call_operand.vmem [shape: f32[2,4,256], index: 0, kind: input, shape index: {}]   ;;  %s581_s1 = inlined_call_operand.vmem [shape: f32[2,4,256], index: 1, kind: input, shape index: {}]   ;;  %s582_s2 = inlined_call_operand.vmem [shape: f32[4,128], index: 2, kind: output, shape index: {}]  }
   0x1   :  { %s534_s11 = smov 0  }
   0x2 LB: > { %s27_s12 = sadd.s32 1, %s508_s10  ;;  %p445_p0 = scmp.ge.s32.totalorder %s512_s11, 1  ;;  %s512_s11 = sphi %s534_s11, %s12_s11   ;;  %s508_s10 = sphi %s532_s10, %s584_s10   ;;  %s504_s9 = sphi %s530_s9, %s583_s9  }
   0x3   : > { %p29_p1 = scmp.ge.s32.totalorder %s27_s12, 2  ;;  %p167_p2 = scmp.lt.s32.totalorder %s512_s11, 3 }
   0x5   : > { %s586_s12 = smov (%p29_p1, %s27_s12), 0  ;;  %p168_p3 = pnand %p445_p0, %p167_p2 }
   0x6   : > { %p210_p4 = scmp.lt.s32.totalorder (!%p168_p3), %s504_s9, 1  ;;  %p241_p5 = scmp.eq.s32.totalorder (!%p168_p3), %s504_s9, 0 }
   0x7   : > { %171 = sbr.rel (%p168_p3) target bundleno = 228 (0xe4), region = 28 }
   0xc   : > { %s211_s13 = scalar_select %p210_p4, %s504_s9, 1  ;;  %v514_v0 = vmov (%p241_p5), 0.0  }
   0xd   : > { %246 = sbr.rel (!%p241_p5) target bundleno = 18 (0x12), region = 32  ;;  %247 = vst [vmem:[#allocation2] sm:$0xff] (%p241_p5), %v514_v0 }
   0xe   : > { %s455_s14 = sshll.u32 %s211_s13, 3  ;;  %248 = vst [vmem:[#allocation3] sm:$0xff] (%p241_p5), %v514_v0 }
   0xf   : > { %s221_s17 = scalar_lea.vmem %s580_s0, %s455_s14  ;;  %s235_s20 = scalar_lea.vmem %s581_s1, %s455_s14  ;;  %249 = vst [vmem:[#allocation4] sm:$0xff] (%p241_p5), %v514_v0 }
  0x12 PF: > { %v250_v1 = vld [vmem:[%s221_s17] sm:$0xff]  ;;  %p283_p6 = scmp.eq.s32.totalorder %s504_s9, 1 }
  0x13   : > { %v251_v2 = vld [vmem:[%s235_s20] sm:$0xff]  ;;  %v252_v3 = vsub.f32 0.0, %v250_v1  ;;  %vm295_vm4 = vcmask (%p283_p6), 1043456  }
  0x14   : > { %v280_v5 = vmul.f32 %v251_v2, %v251_v2  ;;  %v271_v20 = vld [vmem:[#allocation2] sm:$0xff] }
  0x15   : > { %v253_v6 = vmul.f32 1.442695, %v252_v3  ;;  %v275_v21 = vld [vmem:[#allocation3] sm:$0xff] }
  0x16   : > { %v279_v4 = vld [vmem:[#allocation4] sm:$0xff] }
  0x17   : > { %v281_v7 = vadd.f32 %v280_v5, %v279_v4  ;;  %484 = vpow2.f32 %v253_v6 }
  0x19   : > { %282 = vst [vmem:[#allocation4] sm:$0xff] %v281_v7 }
  0x1d   : > { %v485_v8 = vpop.eup %484 }
  0x1e   : > { %v255_v9 = vadd.f32 1.0, %v485_v8 }
  0x20   : > { %486 = vrcp.f32 %v255_v9  ;;  %v267_v12 = vand.u32 2147483648, %v255_v9  ;;  %vm261_vm0 = vweird.f32 %v255_v9  ;;  %v265_v14 = vand.u32 2147483647, %v255_v9  ;;  %v313_v33 = vld [vmem:[#allocation4] sm:$0xff] (%p283_p6) }
  0x22   : > { %v268_v16 = vor.u32 1.1754944e-38, %v267_v12  ;;  %vm266_vm3 = vcmp.eq.f32.partialorder %v265_v14, 8.507059e+37 }
  0x26   : > { %v487_v10 = vpop.eup %486 }
  0x27   : > { %v257_v11 = vmul.f32 %v487_v10, %v255_v9  ;;  %vm262_vm1 = vweird.f32 %v487_v10 }
  0x28   : > { %vm263_vm2 = vmor %vm261_vm0, %vm262_vm1 }
  0x29   : > { %v258_v13 = vsub.f32 1.0, %v257_v11 }
  0x2b   : > { %v259_v15 = vmul.f32 %v487_v10, %v258_v13 }
  0x2d   : > { %v260_v17 = vadd.f32 %v487_v10, %v259_v15 }
  0x2f   : > { %v264_v18 = vsel %vm263_vm2, %v487_v10, %v260_v17 }
  0x30   : > { %v269_v19 = vsel %vm266_vm3, %v268_v16, %v264_v18 }
  0x31   : > { %v272_v22 = vmul.f32 %v269_v19, %v251_v2  ;;  %v276_v23 = vmul.f32 %v269_v19, %v269_v19 }
  0x32   : > { %287 = sbr.rel (!%p283_p6) target bundleno = 228 (0xe4), region = 36 }
  0x33   : > { %v273_v24 = vadd.f32 %v272_v22, %v271_v20  ;;  %v277_v25 = vadd.f32 %v276_v23, %v275_v21 }
  0x35   : > { %274 = vst [vmem:[#allocation2] sm:$0xff] %v273_v24 }
  0x36   : > { %278 = vst [vmem:[#allocation3] sm:$0xff] %v277_v25 }
  0x3c   : > { %v288_v26 = vld [vmem:[#allocation2] sm:$0xff] }
  0x3d   : > { %290 = vst [vmem:[#allocation1] ss:$2 sm:$0xff] %v288_v26  ;;  %v301_v27 = vld [vmem:[#allocation3] sm:$0xff] }
  0x44   : > { %v291_v28 = vld.sshfl [vmem:[#allocation1] sm:$0xff pattern:$0x75316420]  ;;  %v292_v29 = vld.sshfl [vmem:[#allocation1 + $0x8] sm:$0xff pattern:$0x75316420] }
  0x45   : > { %303 = vst [vmem:[#allocation1] ss:$2 sm:$0xff] %v301_v27  ;;  %v296_v30 = vsel %vm295_vm4, %v291_v28, 0.0  ;;  %v297_v31 = vsel %vm295_vm4, %v292_v29, 0.0 }
  0x46   : > { %v298_v32 = vadd.f32 %v297_v31, %v296_v30 }
  0x48   : > { %299 = vadd.xlane.f32.xlu1 %v298_v32 }
  0x4c   : > { %v304_v34 = vld.sshfl [vmem:[#allocation1] sm:$0xff pattern:$0x75316420]  ;;  %v305_v35 = vld.sshfl [vmem:[#allocation1 + $0x8] sm:$0xff pattern:$0x75316420] }
  0x4d   : > { %v308_v36 = vsel %vm295_vm4, %v304_v34, 0.0  ;;  %v309_v37 = vsel %vm295_vm4, %v305_v35, 0.0  ;;  %315 = vst [vmem:[#allocation1] ss:$2 sm:$0xff] %v313_v33 }
  0x4e   : > { %v310_v38 = vadd.f32 %v309_v37, %v308_v36 }
  0x50   : > { %311 = vadd.xlane.f32.xlu0 %v310_v38 }
  0x54   : > { %v316_v39 = vld.sshfl [vmem:[#allocation1] sm:$0xff pattern:$0x75316420]  ;;  %v317_v40 = vld.sshfl [vmem:[#allocation1 + $0x8] sm:$0xff pattern:$0x75316420] }
  0x55   : > { %v320_v41 = vsel %vm295_vm4, %v316_v39, 0.0  ;;  %v321_v42 = vsel %vm295_vm4, %v317_v40, 0.0 }
  0x56   : > { %v322_v43 = vadd.f32 %v321_v42, %v320_v41 }
  0x58   : > { %323 = vadd.xlane.f32.xlu0 %v322_v43 }
  0xbb   : > { %v300_v52 = vpop.xlane.xlu1 %299 }
  0xbc   : > { %v326_v56 = vmul.f32 2.0, %v300_v52 }
  0xc3   : > { %v312_v44 = vpop.xlane.xlu0 %311 }
  0xcb   : > { %v324_v45 = vpop.xlane.xlu0 %323 }
  0xcc   : > { %v325_v46 = vadd.f32 %v324_v45, %v312_v44 }
  0xce   : > { %v327_v47 = vmax.f32 %v325_v46, 1e-06 }
  0xd0   : > { %488 = vrcp.f32 %v327_v47  ;;  %v339_v51 = vand.u32 2147483648, %v327_v47  ;;  %v337_v54 = vand.u32 2147483647, %v327_v47  ;;  %vm333_vm6 = vweird.f32 %v327_v47 }
  0xd2   : > { %v340_v57 = vor.u32 1.1754944e-38, %v339_v51  ;;  %vm338_vm8 = vcmp.eq.f32.partialorder %v337_v54, 8.507059e+37 }
  0xd6   : > { %v489_v48 = vpop.eup %488 }
  0xd7   : > { %v329_v49 = vmul.f32 %v489_v48, %v327_v47  ;;  %vm334_vm5 = vweird.f32 %v489_v48 }
  0xd8   : > { %vm335_vm7 = vmor %vm333_vm6, %vm334_vm5 }
  0xd9   : > { %v330_v50 = vsub.f32 1.0, %v329_v49 }
  0xdb   : > { %v331_v53 = vmul.f32 %v489_v48, %v330_v50 }
  0xdd   : > { %v332_v55 = vadd.f32 %v489_v48, %v331_v53 }
  0xdf   : > { %v336_v58 = vsel %vm335_vm7, %v489_v48, %v332_v55 }
  0xe0   : > { %v341_v59 = vsel %vm338_vm8, %v340_v57, %v336_v58 }
  0xe1   : > { %v342_v60 = vmul.f32 %v341_v59, %v326_v56 }
  0xe3   : > { %343 = vst [vmem:[%s582_s2] sm:$0xf] %v342_v60 }
  0xe4 PF: > { %s12_s11 = sadd.s32 1, %s512_s11   ;;  %s583_s9 = smov %s508_s10 }
  0xe5   : > { %p9_p7 = scmp.ge.s32.totalorder %s12_s11, 4   ;;  %s584_s10 = smov %s586_s12 }
  0xe7   :  { %11 = sbr.rel (!%p9_p7) target bundleno = 2 (0x2), region = 69 }

// kernel: _fwd_full.2
= control target key start
LH: loop header
LB: loop body
LE: loop exit
PB: predicated region body
PF: predicated region fallthrough
CT: control target
= control target key end

     0   :  { %s663_s15 = smov 0   ;;  %s665_s16 = smov 0   ;;  %s737_s0 = inlined_call_operand.vmem [shape: f32[8,256], index: 0, kind: input, shape index: {}]   ;;  %s738_s1 = inlined_call_operand.vmem [shape: f32[4,8,256], index: 1, kind: input, shape index: {}]   ;;  %s739_s2 = inlined_call_operand.vmem [shape: s32[1,256], index: 2, kind: input, shape index: {}]   ;;  %s740_s3 = inlined_call_operand.vmem [shape: s32[4,1,256], index: 3, kind: input, shape index: {}]   ;;  %s741_s4 = inlined_call_operand.vmem [shape: f32[4,8,128], index: 4, kind: output, shape index: {}]  }
   0x1   :  { %s667_s17 = smov 0  }
   0x2 LB: > { %s26_s18 = sadd.s32 1, %s631_s16  ;;  %p573_p0 = scmp.ge.s32.totalorder %s635_s17, 1  ;;  %s635_s17 = sphi %s667_s17, %s14_s17   ;;  %s631_s16 = sphi %s665_s16, %s745_s16   ;;  %s627_s15 = sphi %s663_s15, %s744_s15  }
   0x3   : > { %p28_p1 = scmp.ge.s32.totalorder %s26_s18, 4  ;;  %p218_p2 = scmp.lt.s32.totalorder %s635_s17, 5 }
   0x5   : > { %s747_s18 = smov (%p28_p1, %s26_s18), 0  ;;  %p219_p3 = pnand %p573_p0, %p218_p2 }
   0x6   : > { %p271_p4 = scmp.lt.s32.totalorder (!%p219_p3), %s627_s15, 3 }
   0x7   : > { %222 = sbr.rel (%p219_p3) target bundleno = 234 (0xea), region = 36 }
   0xc   : > { %v302_v0 = vlaneseq  ;;  %s749_s15 = smov (!%p271_p4, %s627_s15), 3  ;;  %v637_v2 = vmov 0.0   ;;  %v309_v3 = vld [vmem:[%s737_s0] sm:$0xff]  ;;  %v310_v4 = vld [vmem:[%s737_s0 + $0x8] sm:$0xff]  ;;  %vm379_vm6 = vcmask 1040384  }
   0xd   : > { %s581_s19 = sshll.u32 %s749_s15, 4  ;;  %s576_s27 = sshll.u32 %s749_s15, 1  ;;  %v363_v23 = vld [vmem:[%s739_s2] sm:$0x3] }
   0xe   : > { %vm683_vm0 = vcmp.lt.s32.totalorder %v302_v0, 256  ;;  %s278_s26 = scalar_lea.vmem %s738_s1, %s581_s19  ;;  %s292_s30 = scalar_lea.vmem %s740_s3, %s576_s27 }
   0xf   : > { %306 = vst.msk [vmem:[#allocation2] sm:$0x3] %vm683_vm0, %v637_v2  ;;  %v311_v5 = vld [vmem:[%s278_s26] sm:$0xff]  ;;  %v312_v6 = vld [vmem:[%s278_s26 + $0x8] sm:$0xff]  ;;  %s577_s7 = sshll.u32 %s749_s15, 3 }
  0x10   : > { %307 = vst.msk [vmem:[#allocation3] sm:$0x3] %vm683_vm0, %v637_v2  ;;  %v313_v7 = vsub.f32 %v309_v3, %v311_v5  ;;  %v314_v8 = vsub.f32 %v310_v4, %v312_v6  ;;  %v364_v24 = vld [vmem:[%s292_s30] sm:$0x3]  ;;  %s297_s10 = scalar_lea.vmem %s741_s4, %s577_s7 }
  0x11   : > { %308 = vst.msk [vmem:[#allocation4] sm:$0x3] %vm683_vm0, %v637_v2  ;;  %vm365_vm1 = vcmp.ne.s32.totalorder %v363_v23, %v364_v24 }
  0x12   : > { %v315_v9 = vmul.f32 %v313_v7, %v313_v7  ;;  %v316_v10 = vmul.f32 %v314_v8, %v314_v8  ;;  %v578_v31 = vsel %vm365_vm1, 1.0, %v637_v2 }
  0x13   : > { %v370_v56 = vperm.slane %v578_v31, 0  ;;  %v371_v57 = vperm.slane %v578_v31, 1 }
  0x14   : > { %v317_v11 = vrot.slane %v315_v9, 4  ;;  %v323_v12 = vrot.slane %v316_v10, 4 }
  0x16   : > { %v318_v13 = vadd.f32 %v317_v11, %v315_v9  ;;  %v324_v14 = vadd.f32 %v323_v12, %v316_v10  ;;  %v368_v0 = vld [vmem:[#allocation2] sm:$0x3] }
  0x17   : > { %v388_v3 = vld [vmem:[#allocation3] sm:$0x3] }
  0x18   : > { %v319_v15 = vrot.slane %v318_v13, 2  ;;  %v325_v16 = vrot.slane %v324_v14, 2  ;;  %v398_v34 = vld [vmem:[#allocation4] sm:$0x3] }
  0x19   : > { %v399_v36 = vadd.f32 %v578_v31, %v398_v34 }
  0x1a   : > { %v320_v17 = vadd.f32 %v319_v15, %v318_v13  ;;  %v326_v18 = vadd.f32 %v325_v16, %v324_v14 }
  0x1b   : > { %400 = vst.msk [vmem:[#allocation4] sm:$0x3] %vm683_vm0, %v399_v36 }
  0x1c   : > { %v321_v19 = vrot.slane %v320_v17, 1  ;;  %v327_v20 = vrot.slane %v326_v18, 1 }
  0x1e   : > { %v322_v21 = vadd.f32 %v321_v19, %v320_v17  ;;  %v328_v22 = vadd.f32 %v327_v20, %v326_v18 }
  0x20   : > { %607 = vrsqrt.f32 %v322_v21  ;;  %vm336_vm2 = vcmp.eq.f32.partialorder %v322_v21, inf  ;;  %v339_v39 = vand.u32 2147483648, %v322_v21  ;;  %vm338_vm3 = vcmp.eq.f32.partialorder %v322_v21, 0.0 }
  0x21   : > { %609 = vrsqrt.f32 %v328_v22  ;;  %vm348_vm4 = vcmp.eq.f32.partialorder %v328_v22, inf  ;;  %v351_v42 = vand.u32 2147483648, %v328_v22  ;;  %vm350_vm5 = vcmp.eq.f32.partialorder %v328_v22, 0.0 }
  0x22   : > { %v426_v10 = vld [vmem:[#allocation4] sm:$0x3] }
  0x23   : > { %v428_v18 = vperm.slane %v426_v10, 0  ;;  %v429_v19 = vperm.slane %v426_v10, 1 }
  0x25   : > { %v432_v23 = vsel %vm379_vm6, %v428_v18, 0.0  ;;  %v433_v24 = vsel %vm379_vm6, %v429_v19, 0.0 }
  0x26   : > { %v608_v25 = vpop.eup %607 }
  0x27   : > { %v610_v26 = vpop.eup %609  ;;  %v330_v27 = vmul.f32 %v608_v25, %v322_v21 }
  0x28   : > { %v342_v28 = vmul.f32 %v610_v26, %v328_v22 }
  0x29   : > { %v331_v29 = vmul.f32 %v608_v25, %v330_v27 }
  0x2a   : > { %v343_v30 = vmul.f32 %v610_v26, %v342_v28 }
  0x2b   : > { %v332_v32 = vmul.f32 0.5, %v331_v29 }
  0x2c   : > { %v344_v33 = vmul.f32 0.5, %v343_v30 }
  0x2d   : > { %v333_v35 = vsub.f32 1.5, %v332_v32 }
  0x2e   : > { %v345_v37 = vsub.f32 1.5, %v344_v33 }
  0x2f   : > { %v334_v38 = vmul.f32 %v608_v25, %v333_v35  ;;  %v434_v25 = vadd.f32 %v433_v24, %v432_v23 }
  0x30   : > { %v346_v40 = vmul.f32 %v610_v26, %v345_v37 }
  0x31   : > { %v335_v41 = vmul.f32 %v334_v38, %v322_v21 }
  0x32   : > { %v347_v43 = vmul.f32 %v346_v40, %v328_v22 }
  0x33   : > { %v337_v44 = vsel %vm336_vm2, %v322_v21, %v335_v41 }
  0x34   : > { %v340_v45 = vsel %vm338_vm3, %v339_v39, %v337_v44  ;;  %v349_v46 = vsel %vm348_vm4, %v328_v22, %v347_v43 }
  0x35   : > { %v352_v47 = vsel %vm350_vm5, %v351_v42, %v349_v46  ;;  %v353_v48 = vsub.f32 4.0, %v340_v45 }
  0x36   : > { %v354_v49 = vsub.f32 4.0, %v352_v47 }
  0x37   : > { %v355_v50 = vmul.f32 0.25, %v353_v48 }
  0x38   : > { %v356_v51 = vmul.f32 0.25, %v354_v49 }
  0x39   : > { %v357_v52 = vmax.f32 %v355_v50, 0.0 }
  0x3a   : > { %v358_v53 = vmax.f32 %v356_v51, 0.0 }
  0x3b   : > { %v359_v54 = vmul.f32 %v357_v52, %v357_v52 }
  0x3c   : > { %v360_v55 = vmul.f32 %v358_v53, %v358_v53 }
  0x3d   : > { %v361_v58 = vsub.f32 1.0, %v359_v54 }
  0x3e   : > { %v362_v59 = vsub.f32 1.0, %v360_v55 }
  0x3f   : > { %v389_v61 = vmul.f32 %v361_v58, %v361_v58  ;;  %v374_v63 = vmul.f32 %v370_v56, %v361_v58 }
  0x40   : > { %v375_v60 = vmul.f32 %v371_v57, %v362_v59  ;;  %v390_v62 = vmul.f32 %v362_v59, %v362_v59 }
  0x42   : > { %v378_v2 = vrot.slane %v375_v60, 7  ;;  %v393_v4 = vrot.slane %v390_v62, 7 }
  0x44   : > { %v394_v5 = vsel %vm379_vm6, %v389_v61, %v393_v4  ;;  %v380_v6 = vsel %vm379_vm6, %v374_v63, %v378_v2 }
  0x45   : > { %v396_v7 = vadd.f32 %v394_v5, %v388_v3  ;;  %v382_v8 = vadd.f32 %v380_v6, %v368_v0 }
  0x47   : > { %397 = vst.msk [vmem:[#allocation3] sm:$0x3] %vm683_vm0, %v396_v7 }
  0x48   : > { %387 = vst.msk [vmem:[#allocation2] sm:$0x3] %vm683_vm0, %v382_v8 }
  0x4e   : > { %v415_v9 = vld [vmem:[#allocation3] sm:$0x3] }
  0x4f   : > { %v417_v11 = vperm.slane %v415_v9, 0  ;;  %v418_v12 = vperm.slane %v415_v9, 1  ;;  %v404_v13 = vld [vmem:[#allocation2] sm:$0x3] }
  0x50   : > { %v406_v14 = vperm.slane %v404_v13, 0  ;;  %v407_v15 = vperm.slane %v404_v13, 1 }
  0x51   : > { %v421_v16 = vsel %vm379_vm6, %v417_v11, 0.0  ;;  %v422_v17 = vsel %vm379_vm6, %v418_v12, 0.0 }
  0x52   : > { %v423_v20 = vadd.f32 %v422_v17, %v421_v16  ;;  %v410_v21 = vsel %vm379_vm6, %v406_v14, 0.0  ;;  %v411_v22 = vsel %vm379_vm6, %v407_v15, 0.0 }
  0x53   : > { %v412_v1 = vadd.f32 %v411_v22, %v410_v21 }
  0x54   : > { %424 = vadd.xlane.f32.xlu0 %v423_v20 }
  0x55   : > { %413 = vadd.xlane.f32.xlu1 %v412_v1 }
  0x5c   : > { %435 = vadd.xlane.f32.xlu0 %v434_v25 }
  0xc7   : > { %v425_v26 = vpop.xlane.xlu0 %424 }
  0xc8   : > { %v414_v34 = vpop.xlane.xlu1 %413 }
  0xc9   : > { %v438_v38 = vmul.f32 2.0, %v414_v34 }
  0xcf   : > { %v436_v27 = vpop.xlane.xlu0 %435 }
  0xd0   : > { %v437_v28 = vadd.f32 %v436_v27, %v425_v26 }
  0xd2   : > { %v439_v29 = vmax.f32 %v437_v28, 1e-06 }
  0xd4   : > { %611 = vrcp.f32 %v439_v29  ;;  %v451_v33 = vand.u32 2147483648, %v439_v29  ;;  %v449_v36 = vand.u32 2147483647, %v439_v29  ;;  %vm445_vm8 = vweird.f32 %v439_v29 }
  0xd6   : > { %v452_v39 = vor.u32 1.1754944e-38, %v451_v33  ;;  %vm450_vm10 = vcmp.eq.f32.partialorder %v449_v36, 8.507059e+37 }
  0xda   : > { %v612_v30 = vpop.eup %611 }
  0xdb   : > { %v441_v31 = vmul.f32 %v612_v30, %v439_v29  ;;  %vm446_vm7 = vweird.f32 %v612_v30 }
  0xdc   : > { %vm447_vm9 = vmor %vm445_vm8, %vm446_vm7 }
  0xdd   : > { %v442_v32 = vsub.f32 1.0, %v441_v31 }
  0xdf   : > { %v443_v35 = vmul.f32 %v612_v30, %v442_v32 }
  0xe1   : > { %v444_v37 = vadd.f32 %v612_v30, %v443_v35 }
  0xe3   : > { %v448_v40 = vsel %vm447_vm9, %v612_v30, %v444_v37 }
  0xe4   : > { %v453_v41 = vsel %vm450_vm10, %v452_v39, %v448_v40 }
  0xe5   : > { %v454_v42 = vmul.f32 %v453_v41, %v438_v38 }
  0xe7   : > { %v455_v43 = vperm.slane %v454_v42, 0 }
  0xe9   : > { %456 = vst [vmem:[%s297_s10] sm:$0xff] %v455_v43 }
  0xea PF: > { %s14_s17 = sadd.s32 1, %s635_s17   ;;  %s744_s15 = smov %s631_s16 }
  0xeb   : > { %p11_p5 = scmp.ge.s32.totalorder %s14_s17, 6   ;;  %s745_s16 = smov %s747_s18 }
  0xed   :  { %13 = sbr.rel (!%p11_p5) target bundleno = 2 (0x2), region = 83 }

</bundles_post_ra>
